<compile_context>
chip_gen: v5e
topology: v5e:2x2
jax: 0.10.0
libtpu: 0.0.40
codegen_flags: <defaults>
</compile_context>

<pallas_src>
import functools

import jax
import jax.numpy as jnp
from jax.experimental import pallas as pl
from jax.experimental.pallas import tpu as pltpu

_LANE = 128
_SUBLANE = 8


def _round_up(x, m):
    return (x + m - 1) // m * m


# --------------------------------------------------------------------------- #
# Kernels
# --------------------------------------------------------------------------- #
def _mu_kernel(x_ref, w_ref, b_ref, mu_ref, *, max_mu, unbounded, o):
    """mu = [max_mu * tanh](x @ W_mu + b_mu); compact (TB, O) store."""
    x = x_ref[...].astype(w_ref.dtype)          # in-kernel cast (free; DMA-bound)
    lin = jnp.dot(x, w_ref[...], preferred_element_type=jnp.float32)
    lin = lin + b_ref[...]                      # [TB, O_pad] f32
    mu = lin[:, :o]                             # slice BEFORE tanh: only O lanes hit EUP
    if not unbounded:
        mu = max_mu * jnp.tanh(mu)
    mu_ref[...] = mu.astype(mu_ref.dtype)


def _fused_kernel(x_ref, w_ref, b_ref, mu_ref, sigma_ref, *, max_mu, unbounded,
                  sigma_min, sigma_max, o, o_pad):
    """One MXU pass over [W_mu | W_sigma]; two compact (TB, O) stores."""
    x = x_ref[...].astype(w_ref.dtype)
    lin = jnp.dot(x, w_ref[...], preferred_element_type=jnp.float32)
    lin = lin + b_ref[...]                      # [TB, 2*O_pad] f32
    mu = lin[:, :o]
    if not unbounded:
        mu = max_mu * jnp.tanh(mu)
    sig = jnp.exp(jnp.clip(lin[:, o_pad:o_pad + o], sigma_min, sigma_max))
    mu_ref[...] = mu.astype(mu_ref.dtype)
    sigma_ref[...] = sig.astype(sigma_ref.dtype)


# --------------------------------------------------------------------------- #
# One-time parameter preparation (hoisted out of the per-call forward)
# --------------------------------------------------------------------------- #
def prepare_params(params, *, conditioned_sigma=False, use_bf16=False):
    """Pad weights to lane width, optionally cast to bf16, fuse mu|sigma.

    Call once per parameter update (not per forward)."""
    w_dtype = jnp.bfloat16 if use_bf16 else jnp.float32
    L, O = params["w_mu"].shape
    O_pad = _round_up(O, _LANE)

    w_mu = jnp.pad(params["w_mu"], ((0, 0), (0, O_pad - O))).astype(w_dtype)
    b_mu = jnp.pad(params["b_mu"], ((0, 0), (0, O_pad - O)))           # stays f32
    prep = {"latent_dim": L, "output_dim": O}
    if conditioned_sigma:
        w_sg = jnp.pad(params["w_sigma"],
                       ((0, 0), (0, O_pad - O))).astype(w_dtype)
        b_sg = jnp.pad(params["b_sigma"], ((0, 0), (0, O_pad - O)))
        prep["w"] = jnp.concatenate([w_mu, w_sg], axis=1)              # [L, 2*O_pad]
        prep["b"] = jnp.concatenate([b_mu, b_sg], axis=1)              # [1, 2*O_pad]
    else:
        prep["w"] = w_mu                                               # [L, O_pad]
        prep["b"] = b_mu                                               # [1, O_pad]
        prep["sigma_param"] = params["sigma_param"]                    # [1, O]
    return prep


# --------------------------------------------------------------------------- #
# Forward
# --------------------------------------------------------------------------- #
def diag_gaussian_forward(logits, prep, *, unbounded=False,
                          conditioned_sigma=False, max_mu=1.0,
                          sigma_min=-5.0, sigma_max=2.0,
                          block_b=1024, out_dtype=jnp.float32):
    """Returns (mu, sigma) — the parameters of the NormalWrapper distribution.

    Fixed-sigma path returns sigma as a (1, O) row; Normal broadcasting
    handles the batch dimension lazily (no B x O materialization)."""
    B, L = logits.shape
    O = prep["output_dim"]
    O_pad = _round_up(O, _LANE)
    assert prep["w"].shape[0] == L, "prepared weights do not match latent_dim"

    TB = min(block_b, _round_up(B, _SUBLANE))
    if pl.cdiv(B, TB) == 1 and B > _SUBLANE:
        # Guarantee >= 2 grid steps so the "parallel" axis can shard across
        # v7x's two TensorCores (one idles otherwise).
        TB = _round_up(pl.cdiv(B, 2), _SUBLANE)
    grid = (pl.cdiv(B, TB),)                     # partial tail block is masked

    x_spec = pl.BlockSpec((TB, L), lambda i: (i, 0))          # no K padding
    resident = lambda shape: pl.BlockSpec(shape, lambda i: (0, 0))
    out_spec = pl.BlockSpec((TB, O), lambda i: (i, 0))        # compact store
    cparams = pltpu.CompilerParams(dimension_semantics=("parallel",))

    if not conditioned_sigma:
        kernel = functools.partial(_mu_kernel, max_mu=max_mu,
                                   unbounded=unbounded, o=O)
        mu = pl.pallas_call(
            kernel,
            out_shape=jax.ShapeDtypeStruct((B, O), out_dtype),
            grid=grid,
            in_specs=[x_spec,
                      resident((L, O_pad)),
                      resident((1, O_pad))],
            out_specs=out_spec,
            compiler_params=cparams,
        )(logits, prep["w"], prep["b"])
        # O-element exp, (1, O) row — the distribution broadcasts it.
        sigma = jnp.exp(prep["sigma_param"]).astype(out_dtype)
        return mu, sigma

    kernel = functools.partial(_fused_kernel, max_mu=max_mu,
                               unbounded=unbounded, sigma_min=sigma_min,
                               sigma_max=sigma_max, o=O, o_pad=O_pad)
    mu, sigma = pl.pallas_call(
        kernel,
        out_shape=(jax.ShapeDtypeStruct((B, O), out_dtype),
                   jax.ShapeDtypeStruct((B, O), out_dtype)),
        grid=grid,
        in_specs=[x_spec,
                  resident((L, 2 * O_pad)),
                  resident((1, 2 * O_pad))],
        out_specs=(out_spec, out_spec),
        compiler_params=cparams,
    )(logits, prep["w"], prep["b"])
    return mu, sigma


# --------------------------------------------------------------------------- #
# Synthetic params + pure-JAX reference
# --------------------------------------------------------------------------- #
def init_params(key, latent_dim, output_dim, conditioned_sigma=False):
    """Deterministic synthetic parameter init (PyTorch-like uniform bounds)."""
    k1, k2, k3, k4 = jax.random.split(key, 4)
    bound = 1.0 / jnp.sqrt(latent_dim)
    params = {
        "w_mu": jax.random.uniform(k1, (latent_dim, output_dim), jnp.float32,
                                   -bound, bound),
        "b_mu": jax.random.uniform(k2, (1, output_dim), jnp.float32,
                                   -bound, bound),
        # sigma_param is initialized to zeros in the module
        "sigma_param": jnp.zeros((1, output_dim), jnp.float32),
    }
    if conditioned_sigma:
        params["w_sigma"] = jax.random.uniform(k3, (latent_dim, output_dim),
                                               jnp.float32, -bound, bound)
        params["b_sigma"] = jax.random.uniform(k4, (1, output_dim),
                                               jnp.float32, -bound, bound)
    return params


def _reference(logits, params, *, unbounded, conditioned_sigma, max_mu,
               sigma_min, sigma_max):
    mu = logits @ params["w_mu"] + params["b_mu"]
    if not unbounded:
        mu = max_mu * jnp.tanh(mu)
    if conditioned_sigma:
        sg = logits @ params["w_sigma"] + params["b_sigma"]
        sigma = jnp.exp(jnp.clip(sg, sigma_min, sigma_max))
    else:
        sigma = jnp.exp(jnp.broadcast_to(params["sigma_param"], mu.shape))
    return mu, sigma


if __name__ == "__main__":
    key = jax.random.PRNGKey(0)
    B, latent_dim, output_dim = 8, 32, 8

    kx, kp, kx2 = jax.random.split(key, 3)
    logits = jax.random.normal(kx, (B, latent_dim), jnp.float32)

    # ---- default config: unbounded=False, conditioned_sigma=False ----------
    params = init_params(kp, latent_dim, output_dim, conditioned_sigma=False)
    prep = prepare_params(params, conditioned_sigma=False)
    mu, sigma = diag_gaussian_forward(logits, prep, unbounded=False,
                                      conditioned_sigma=False, max_mu=1.0)
    jax.block_until_ready((mu, sigma))
    mu_ref, sigma_ref = _reference(logits, params, unbounded=False,
                                   conditioned_sigma=False, max_mu=1.0,
                                   sigma_min=-5.0, sigma_max=2.0)
    assert mu.shape == (B, output_dim) and sigma.shape == (1, output_dim)
    assert jnp.allclose(mu, mu_ref, atol=1e-5, rtol=1e-5)
    assert jnp.allclose(jnp.broadcast_to(sigma, (B, output_dim)), sigma_ref,
                        atol=1e-5, rtol=1e-5)

    # ---- conditioned_sigma branch (fused single-matmul kernel) -------------
    params_c = init_params(kp, latent_dim, output_dim, conditioned_sigma=True)
    prep_c = prepare_params(params_c, conditioned_sigma=True)
    mu_c, sigma_c = diag_gaussian_forward(logits, prep_c, unbounded=False,
                                          conditioned_sigma=True, max_mu=1.0,
                                          sigma_min=-5.0, sigma_max=2.0)
    jax.block_until_ready((mu_c, sigma_c))
    mu_cr, sigma_cr = _reference(logits, params_c, unbounded=False,
                                 conditioned_sigma=True, max_mu=1.0,
                                 sigma_min=-5.0, sigma_max=2.0)
    assert jnp.allclose(mu_c, mu_cr, atol=1e-5, rtol=1e-5)
    assert jnp.allclose(sigma_c, sigma_cr, atol=1e-5, rtol=1e-5)

    # ---- larger, non-divisible batch: multi-step grid + masked tail --------
    B2 = 300
    logits2 = jax.random.normal(kx2, (B2, latent_dim), jnp.float32)
    mu2, sigma2 = diag_gaussian_forward(logits2, prep_c, unbounded=False,
                                        conditioned_sigma=True, max_mu=1.0,
                                        sigma_min=-5.0, sigma_max=2.0,
                                        block_b=128)   # grid=(3,), tail masked
    jax.block_until_ready((mu2, sigma2))
    mu2_ref, sigma2_ref = _reference(logits2, params_c, unbounded=False,
                                     conditioned_sigma=True, max_mu=1.0,
                                     sigma_min=-5.0, sigma_max=2.0)
    assert mu2.shape == (B2, output_dim) and sigma2.shape == (B2, output_dim)
    assert jnp.allclose(mu2, mu2_ref, atol=1e-5, rtol=1e-5)
    assert jnp.allclose(sigma2, sigma2_ref, atol=1e-5, rtol=1e-5)

    # ---- default block_b path: grid auto-split to 2 steps (v7x megacore) ---
    mu2b, sigma2b = diag_gaussian_forward(logits2, prep_c, unbounded=False,
                                          conditioned_sigma=True, max_mu=1.0,
                                          sigma_min=-5.0, sigma_max=2.0)
    jax.block_until_ready((mu2b, sigma2b))
    assert jnp.allclose(mu2b, mu2_ref, atol=1e-5, rtol=1e-5)
    assert jnp.allclose(sigma2b, sigma2_ref, atol=1e-5, rtol=1e-5)

    # ---- bf16 operands + bf16 outputs (all generations; f32 accum inside) --
    prep_bf16 = prepare_params(params_c, conditioned_sigma=True, use_bf16=True)
    mu_b, sigma_b = diag_gaussian_forward(logits2, prep_bf16, unbounded=False,
                                          conditioned_sigma=True, max_mu=1.0,
                                          sigma_min=-5.0, sigma_max=2.0,
                                          out_dtype=jnp.bfloat16)
    jax.block_until_ready((mu_b, sigma_b))
    assert jnp.allclose(mu_b.astype(jnp.float32), mu2_ref, atol=5e-2, rtol=5e-2)
    assert jnp.allclose(sigma_b.astype(jnp.float32), sigma2_ref,
                        atol=5e-2, rtol=5e-2)

    # TODO(synk): NormalWrapper's sampling / log_prob / entropy are distribution
    # methods, not part of forward(); only (mu, sigma) are computed in-kernel.
    print("KERNEL_OK")
</pallas_src>

<mosaic_0001>
module attributes {stable_mosaic.version = 11 : i64} {
  func.func @_mu_kernel(%arg0: i32, %arg1: memref<8x32xf32, #tpu.memory_space<vmem>>, %arg2: memref<32x128xf32, #tpu.memory_space<vmem>>, %arg3: memref<1x128xf32, #tpu.memory_space<vmem>>, %arg4: memref<8x8xf32, #tpu.memory_space<vmem>>) attributes {dimension_semantics = [#tpu.dimension_semantics<parallel>], iteration_bounds = array<i64: 1>, scalar_prefetch = 0 : i64, scratch_operands = 0 : i64, tpu.core_type = #tpu.core_type<tc>, window_params = [{transform_indices = @transform_0, window_bounds = array<i64: 8, 32>}, {pipeline_mode = #tpu.pipeline_mode<synchronous>, transform_indices = @transform_1, window_bounds = array<i64: 32, 128>}, {pipeline_mode = #tpu.pipeline_mode<synchronous>, transform_indices = @transform_2, window_bounds = array<i64: 1, 128>}, {transform_indices = @transform_3, window_bounds = array<i64: 8, 8>}]} {
    %c0 = arith.constant 0 : index
    %c0_0 = arith.constant 0 : index
    %0 = vector.load %arg1[%c0, %c0_0] : memref<8x32xf32, #tpu.memory_space<vmem>>, vector<8x32xf32>
    %c0_1 = arith.constant 0 : index
    %c0_2 = arith.constant 0 : index
    %1 = vector.load %arg2[%c0_1, %c0_2] : memref<32x128xf32, #tpu.memory_space<vmem>>, vector<32x128xf32>
    %cst = arith.constant dense<0.000000e+00> : vector<8x128xf32>
    %2 = tpu.matmul %0, %1, %cst {dimension_numbers = #tpu.dot_dimension_numbers<[1], [0], [0], [1], [0, 0, 1, 1], [], []>} : vector<8x32xf32>, vector<32x128xf32>, vector<8x128xf32> -> vector<8x128xf32>
    %c0_3 = arith.constant 0 : index
    %c0_4 = arith.constant 0 : index
    %3 = vector.load %arg3[%c0_3, %c0_4] : memref<1x128xf32, #tpu.memory_space<vmem>>, vector<1x128xf32>
    %4 = vector.broadcast %3 : vector<1x128xf32> to vector<8x128xf32>
    %5 = arith.addf %2, %4 : vector<8x128xf32>
    %6 = vector.extract_strided_slice %5 {offsets = [0, 0], sizes = [8, 8], strides = [1, 1]} : vector<8x128xf32> to vector<8x8xf32>
    %7 = math.tanh %6 : vector<8x8xf32>
    %cst_5 = arith.constant 1.000000e+00 : f32
    %8 = vector.broadcast %cst_5 : f32 to vector<8x8xf32>
    %9 = arith.mulf %8, %7 : vector<8x8xf32>
    %c0_6 = arith.constant 0 : index
    %c0_7 = arith.constant 0 : index
    %10 = vector.load %arg4[%c0_6, %c0_7] : memref<8x8xf32, #tpu.memory_space<vmem>>, vector<8x8xf32>
    tpu.vector_store %arg4[%c0_6, %c0_7], %9 {strides = array<i32>} : memref<8x8xf32, #tpu.memory_space<vmem>>, vector<8x8xf32>,
    return
  }
  func.func @transform_0(%arg0: i32) -> (i32, i32) {
    %c0_i32 = arith.constant 0 : i32
    %c0_i32_0 = arith.constant 0 : i32
    return %arg0, %c0_i32 : i32, i32
  }
  func.func @transform_1(%arg0: i32) -> (i32, i32) {
    %c0_i32 = arith.constant 0 : i32
    %c0_i32_0 = arith.constant 0 : i32
    %c0_i32_1 = arith.constant 0 : i32
    return %c0_i32, %c0_i32_0 : i32, i32
  }
  func.func @transform_2(%arg0: i32) -> (i32, i32) {
    %c0_i32 = arith.constant 0 : i32
    %c0_i32_0 = arith.constant 0 : i32
    %c0_i32_1 = arith.constant 0 : i32
    return %c0_i32, %c0_i32_0 : i32, i32
  }
  func.func @transform_3(%arg0: i32) -> (i32, i32) {
    %c0_i32 = arith.constant 0 : i32
    %c0_i32_0 = arith.constant 0 : i32
    return %arg0, %c0_i32 : i32, i32
  }
}

</mosaic_0001>

<bundles_post_ra>
// kernel: tpu_custom_call.1
= control target key start
LH: loop header
LB: loop body
LE: loop exit
PB: predicated region body
PF: predicated region fallthrough
CT: control target
= control target key end

     0   :  { %8 = vsyncpa [#allocation3], 0  ;;  %s223_s0 = inlined_call_operand.hbm [shape: f32[8,32], index: 0, kind: input, shape index: {}]   ;;  %s224_s1 = inlined_call_operand.hbm [shape: f32[32,128], index: 1, kind: input, shape index: {}]   ;;  %s225_s2 = inlined_call_operand.vmem [shape: f32[1,128], index: 2, kind: input, shape index: {}]   ;;  %s226_s3 = inlined_call_operand.hbm [shape: f32[8,8], index: 3, kind: output, shape index: {}]  }
   0x1   :  { %9 = vsyncpa [#allocation6], 0 }
   0x2   :  { %10 = vsyncpa [#allocation4], 0  ;;  %s16_s14 = sshll.u32 %s223_s0, 4  ;;  %s186_s15 = smov [#allocation2]   ;;  %s17_s14 = int_to_ptr.hbm [resolvable:$true] %s16_s14 }
   0x3   :  { %s18_s16 = sshll.u32 %s186_s15, 4  ;;  %s26_s19 = sshll.u32 %s224_s1, 4  ;;  %s19_s16 = int_to_ptr.vmem [resolvable:$true] %s18_s16  ;;  %s27_s19 = int_to_ptr.hbm [resolvable:$true] %s26_s19 }
   0x4   :  { %21 = dma.hbm_to_vmem [thread:$0]  %s17_s14, 128, %s19_s16, [#allocation3]  }
   0x5   :  { %s187_s20 = smov [#allocation5]   ;;  %s188_s22 = smov 128  }
   0x6   :  { %s28_s21 = sshll.u32 %s187_s20, 4  ;;  %s189_s23 = smov 8   ;;  %s29_s21 = int_to_ptr.vmem [resolvable:$true] %s28_s21 }
   0x7   :  { %34 = dma.hbm_to_vmem [thread:$0]  %s27_s19, 512, %s29_s21, [#allocation6], %s188_s22, %s188_s22, %s189_s23  }
   0x8   :  { %180 = dma.done.wait [#allocation3], 128  }
   0x9   :  { %181 = vsyncadd [#allocation3], 4294967168 }
   0xa   :  { %182 = dma.done.wait [#allocation6], 512  }
   0xb   :  { %183 = vsyncadd [#allocation6], 4294966784  ;;  %v49_v0 = vld [vmem:[#allocation5 + $0x18] sm:$0xff]  ;;  %v48_v1 = vld [vmem:[#allocation5 + $0x10] sm:$0xff]  ;;  %vm54_vm0 = vcmask 261120   ;;  %s190_s24 = smov [#allocation7]  }
   0xc   :  { %70 = vmatpush.msra.mxu0 %v49_v0  ;;  %v47_v2 = vld [vmem:[#allocation5 + $0x8] sm:$0xff]  ;;  %v46_v3 = vld [vmem:[#allocation5] sm:$0xff]  ;;  %v45_v4 = vld [vmem:[#allocation2] sm:$0xff]  ;;  %s86_s25 = sshll.u32 %s190_s24, 4  ;;  %s88_s28 = sshll.u32 %s226_s3, 4  ;;  %vm79_vm1 = vcmask 64512   ;;  %s87_s25 = int_to_ptr.vmem [resolvable:$true] %s86_s25  ;;  %s89_s28 = int_to_ptr.hbm [resolvable:$true] %s88_s28 }
   0xd   :  { %v105_v5 = vld [vmem:[%s225_s2] ss:$0 sm:$0xff] }
   0xe   :  { %71 = vmatpush.msra.mxu0 %v48_v1 }
  0x10   :  { %72 = vmatpush.msra.mxu0 %v47_v2 }
  0x12   :  { %73 = vmatpush.msra.mxu0 %v46_v3 }
  0x13   :  { %99 = vmatmul.msk.f32.vlgmr.msra.gmra.mxu0 %vm54_vm0, %v45_v4 }
  0x90   :  { %v75_v6 = vpop.f32.mrf.mxu0 }
  0x91   :  { %v76_v7 = vadd.f32 %v105_v5, %v75_v6 }
  0x93   :  { %106 = vtanh.f32 %v76_v7 }
  0x99   :  { %v107_v8 = vpop.eup %106 }
  0x9a   :  { %80 = vst.msk [vmem:[#allocation7] sm:$0xff] %vm79_vm1, %v107_v8 }
  0x9b   :  { %91 = dma.vmem_to_hbm [thread:$0]  %s87_s25, 128, %s89_s28, [#allocation4]  }
  0x9c   :  { %184 = dma.done.wait [#allocation4], 128  }
  0x9d   :  { %185 = vsyncadd [#allocation4], 4294967168 }
  0x9e   :  { %96 = vsyncpa [#allocation3], 1 }
  0x9f   :  { %97 = vsyncpa [#allocation6], 1 }
  0xa0   :  { %98 = vsyncpa [#allocation4], 1 }

</bundles_post_ra>
